<compile_context>
chip_gen: v6e
topology: v6e:2x2x1
jax: 0.10.0
libtpu: 0.0.40
codegen_flags: <defaults>
</compile_context>

<pallas_src>
import functools

import jax
import jax.numpy as jnp
from jax import lax
from jax.experimental import pallas as pl
from jax.experimental.pallas import tpu as pltpu

_MIB = 1024 * 1024


def _sublane_multiple(itemsize):
    # Sub-32-bit dtypes pack along sublanes: (16,128) for 2-byte, (32,128) for 1-byte.
    return {1: 32, 2: 16, 4: 8}.get(itemsize, 8)


def _plan_tile_rows(n, c, itemsize, *, tile_hbm_bytes, vmem_buffer_bytes):
    """Pick the row tile from an HBM-bytes-per-step target and a VMEM budget."""
    mult = _sublane_multiple(itemsize)
    lanes = ((c + 127) // 128) * 128        # last dim is lane-padded to 128 in VMEM
    x_row_vmem = lanes * itemsize           # VMEM bytes per row of the input tile
    t_row_vmem = 128 * 4                    # (bt,1) int32 targets tile, lane padded
    row_hbm = c * itemsize + 4              # HBM bytes actually streamed per row
    bt = min(tile_hbm_bytes // row_hbm,
             vmem_buffer_bytes // (x_row_vmem + t_row_vmem))
    n_ceil = ((n + mult - 1) // mult) * mult
    bt = min(int(bt), n_ceil)               # never bigger than the (rounded-up) batch
    bt = max(mult, (bt // mult) * mult)
    vmem_need = 2 * bt * (x_row_vmem + t_row_vmem)   # double-buffered input tiles
    return bt, vmem_need


def _ce_kernel(x_ref, t_ref, out_ref, acc_ref, *, n_rows, block_rows, inv_n):
    step = pl.program_id(0)

    @pl.when(step == 0)
    def _init():
        acc_ref[...] = jnp.zeros_like(acc_ref)

    x = x_ref[...]                                     # (bt, C), native dtype
    t = t_ref[...]                                     # (bt, 1) int32
    cols = lax.broadcasted_iota(jnp.int32, x.shape, 1)
    is_target = cols == t                              # one-hot mask, never stored

    # Select the target probability per row (exactly one hit per row) in the
    # native dtype (exact: C-1 zeros + one value); upcast only the picked column.
    picked = jnp.sum(jnp.where(is_target, x, jnp.zeros_like(x)),
                     axis=1, keepdims=True).astype(jnp.float32)

    # Ragged last tile: rows past the real batch contribute -log(1) = 0.
    rows = step * block_rows + lax.broadcasted_iota(jnp.int32, picked.shape, 0)
    picked = jnp.where(rows < n_rows, picked, jnp.float32(1.0))

    acc_ref[...] += jnp.sum(-jnp.log(picked))

    @pl.when(step == pl.num_programs(0) - 1)
    def _finalize():
        out_ref[0, 0] = jnp.sum(acc_ref[...]) * jnp.float32(inv_n)


def cross_entropy_loss(inputs, targets, *, block_rows=None,
                       tile_hbm_bytes=4 * _MIB, vmem_buffer_bytes=16 * _MIB):
    """inputs: (N, C) probabilities (f32/bf16), targets: (N,) int -> scalar f32."""
    n, c = inputs.shape
    itemsize = jnp.dtype(inputs.dtype).itemsize
    mult = _sublane_multiple(itemsize)

    if block_rows is None:
        bt, vmem_need = _plan_tile_rows(
            n, c, itemsize,
            tile_hbm_bytes=tile_hbm_bytes, vmem_buffer_bytes=vmem_buffer_bytes)
    else:
        bt = max(mult, (int(block_rows) // mult) * mult)
        lanes = ((c + 127) // 128) * 128
        vmem_need = 2 * bt * (lanes * itemsize + 128 * 4)

    grid = (pl.cdiv(n, bt),)
    # Free layout change only (reshape + dtype); no padding / no HBM copy.
    targets2d = targets.reshape(n, 1).astype(jnp.int32)

    vmem_limit = int(min(48 * _MIB, max(16 * _MIB, vmem_need + 2 * _MIB)))

    kernel = functools.partial(
        _ce_kernel, n_rows=n, block_rows=bt, inv_n=1.0 / float(n))

    out = pl.pallas_call(
        kernel,
        out_shape=jax.ShapeDtypeStruct((1, 1), jnp.float32),
        grid=grid,
        in_specs=[
            pl.BlockSpec((bt, c), lambda b: (b, 0)),
            pl.BlockSpec((bt, 1), lambda b: (b, 0)),
        ],
        out_specs=pl.BlockSpec(memory_space=pltpu.MemorySpace.SMEM),
        scratch_shapes=[pltpu.VMEM((1, 1), jnp.float32)],
        compiler_params=pltpu.CompilerParams(
            dimension_semantics=("arbitrary",),
            vmem_limit_bytes=vmem_limit,
        ),
    )(inputs, targets2d)
    return out[0, 0]


def cross_entropy_loss_ref(inputs, targets):
    """Pure-JAX mirror of the torch forward."""
    x = inputs.astype(jnp.float32)
    gt = jax.nn.one_hot(targets, x.shape[1], dtype=jnp.float32)
    loss = -gt * jnp.log(x)
    return jnp.mean(jnp.sum(loss, axis=1))


if __name__ == "__main__":
    key = jax.random.PRNGKey(0)
    k1, k2 = jax.random.split(key)

    N, C = 50, 32   # N deliberately not a multiple of the tile -> ragged last tile
    logits = jax.random.normal(k1, (N, C), dtype=jnp.float32)
    probs = jax.nn.softmax(logits, axis=-1)          # strictly positive probs
    targets = jax.random.randint(k2, (N,), 0, C, dtype=jnp.int32)

    ref = jax.block_until_ready(cross_entropy_loss_ref(probs, targets))

    # Multi-step grid (4 tiles, masked ragged last tile).
    out_small = jax.block_until_ready(
        cross_entropy_loss(probs, targets, block_rows=16))
    assert jnp.allclose(out_small, ref, rtol=1e-5, atol=1e-6), (out_small, ref)

    # Budget-driven tiling (single tile at this size).
    out_auto = jax.block_until_ready(cross_entropy_loss(probs, targets))
    assert jnp.allclose(out_auto, ref, rtol=1e-5, atol=1e-6), (out_auto, ref)

    # bf16 input path: 16-row sublane multiple, native-dtype select, f32 log.
    probs_bf16 = probs.astype(jnp.bfloat16)
    ref_bf16 = jax.block_until_ready(cross_entropy_loss_ref(probs_bf16, targets))
    out_bf16 = jax.block_until_ready(
        cross_entropy_loss(probs_bf16, targets, block_rows=16))
    assert jnp.allclose(out_bf16, ref_bf16, rtol=1e-4, atol=1e-5), (out_bf16, ref_bf16)

    print("KERNEL_OK")
</pallas_src>

<mosaic_0001>
module attributes {stable_mosaic.version = 11 : i64} {
  func.func @_ce_kernel(%arg0: i32, %arg1: memref<16x32xf32, #tpu.memory_space<vmem>>, %arg2: memref<16x1xi32, #tpu.memory_space<vmem>>, %arg3: memref<1x1xf32, #tpu.memory_space<smem>>, %arg4: memref<1x1xf32, #tpu.memory_space<vmem>>) attributes {dimension_semantics = [#tpu.dimension_semantics<arbitrary>], iteration_bounds = array<i64: 4>, scalar_prefetch = 0 : i64, scratch_operands = 1 : i64, tpu.core_type = #tpu.core_type<tc>, window_params = [{transform_indices = @transform_0, window_bounds = array<i64: 16, 32>}, {transform_indices = @transform_1, window_bounds = array<i64: 16, 1>}, {transform_indices = @transform_2, window_bounds = array<i64: 1, 1>}]} {
    %c0_i32 = arith.constant 0 : i32
    %0 = arith.cmpi eq, %arg0, %c0_i32 : i32
    %1 = arith.extui %0 : i1 to i32
    %c0_i32_0 = arith.constant 0 : i32
    %2 = arith.cmpi ne, %1, %c0_i32_0 : i32
    scf.if %2 {
      %cst_13 = arith.constant 0.000000e+00 : f32
      %34 = vector.broadcast %cst_13 : f32 to vector<1x1xf32>
      %c0_14 = arith.constant 0 : index
      %c0_15 = arith.constant 0 : index
      %35 = vector.load %arg4[%c0_14, %c0_15] : memref<1x1xf32, #tpu.memory_space<vmem>>, vector<1x1xf32>
      tpu.vector_store %arg4[%c0_14, %c0_15], %34 {strides = array<i32>} : memref<1x1xf32, #tpu.memory_space<vmem>>, vector<1x1xf32>,
    } else {
    }
    %c0 = arith.constant 0 : index
    %c0_1 = arith.constant 0 : index
    %3 = vector.load %arg1[%c0, %c0_1] : memref<16x32xf32, #tpu.memory_space<vmem>>, vector<16x32xf32>
    %c0_2 = arith.constant 0 : index
    %c0_3 = arith.constant 0 : index
    %4 = vector.load %arg2[%c0_2, %c0_3] : memref<16x1xi32, #tpu.memory_space<vmem>>, vector<16x1xi32>
    %5 = tpu.iota {dimensions = array<i32: 1>} : vector<16x32xi32>
    %6 = vector.broadcast %4 : vector<16x1xi32> to vector<16x32xi32>
    %7 = arith.cmpi eq, %5, %6 : vector<16x32xi32>
    %cst = arith.constant 0.000000e+00 : f32
    %8 = vector.broadcast %cst : f32 to vector<16x32xf32>
    %9 = arith.select %7, %3, %8 : vector<16x32xi1>, vector<16x32xf32>
    %cst_4 = arith.constant dense<0.000000e+00> : vector<16xf32>
    %10 = vector.multi_reduction <add>, %9, %cst_4 [1] : vector<16x32xf32> to vector<16xf32>
    %11 = vector.shape_cast %10 : vector<16xf32> to vector<16x1xf32>
    %c16_i32 = arith.constant 16 : i32
    %12 = arith.muli %arg0, %c16_i32 : i32
    %13 = tpu.iota {dimensions = array<i32: 0>} : vector<16x1xi32>
    %14 = vector.broadcast %12 : i32 to vector<16x1xi32>
    %15 = arith.addi %14, %13 : vector<16x1xi32>
    %c50_i32 = arith.constant 50 : i32
    %16 = vector.broadcast %c50_i32 : i32 to vector<16x1xi32>
    %17 = arith.cmpi slt, %15, %16 : vector<16x1xi32>
    %cst_5 = arith.constant 1.000000e+00 : f32
    %18 = vector.broadcast %cst_5 : f32 to vector<16x1xf32>
    %19 = arith.select %17, %11, %18 : vector<16x1xi1>, vector<16x1xf32>
    %c0_6 = arith.constant 0 : index
    %c0_7 = arith.constant 0 : index
    %20 = vector.load %arg4[%c0_6, %c0_7] : memref<1x1xf32, #tpu.memory_space<vmem>>, vector<1x1xf32>
    %21 = math.log %19 : vector<16x1xf32>
    %cst_8 = arith.constant 0.000000e+00 : f32
    %22 = vector.broadcast %cst_8 : f32 to vector<16x1xf32>
    %23 = arith.subf %22, %21 : vector<16x1xf32>
    %24 = vector.shape_cast %23 : vector<16x1xf32> to vector<1x16x1xf32>
    %cst_9 = arith.constant dense<0.000000e+00> : vector<1xf32>
    %25 = vector.multi_reduction <add>, %24, %cst_9 [1, 2] : vector<1x16x1xf32> to vector<1xf32>
    %26 = vector.shape_cast %25 : vector<1xf32> to vector<1x1x1xf32>
    %27 = vector.extract %26[0, 0, 0] : f32 from vector<1x1x1xf32>
    %28 = vector.broadcast %27 : f32 to vector<1x1xf32>
    %29 = arith.addf %20, %28 : vector<1x1xf32>
    %c0_10 = arith.constant 0 : index
    %c0_11 = arith.constant 0 : index
    %30 = vector.load %arg4[%c0_10, %c0_11] : memref<1x1xf32, #tpu.memory_space<vmem>>, vector<1x1xf32>
    tpu.vector_store %arg4[%c0_10, %c0_11], %29 {strides = array<i32>} : memref<1x1xf32, #tpu.memory_space<vmem>>, vector<1x1xf32>,
    %c3_i32 = arith.constant 3 : i32
    %31 = arith.cmpi eq, %arg0, %c3_i32 : i32
    %32 = arith.extui %31 : i1 to i32
    %c0_i32_12 = arith.constant 0 : i32
    %33 = arith.cmpi ne, %32, %c0_i32_12 : i32
    scf.if %33 {
      %c0_13 = arith.constant 0 : index
      %c0_14 = arith.constant 0 : index
      %34 = vector.load %arg4[%c0_13, %c0_14] : memref<1x1xf32, #tpu.memory_space<vmem>>, vector<1x1xf32>
      %35 = vector.shape_cast %34 : vector<1x1xf32> to vector<1x1x1xf32>
      %cst_15 = arith.constant dense<0.000000e+00> : vector<1xf32>
      %36 = vector.multi_reduction <add>, %35, %cst_15 [1, 2] : vector<1x1x1xf32> to vector<1xf32>
      %37 = vector.shape_cast %36 : vector<1xf32> to vector<1x1x1xf32>
      %38 = vector.extract %37[0, 0, 0] : f32 from vector<1x1x1xf32>
      %cst_16 = arith.constant 2.000000e-02 : f32
      %39 = arith.mulf %38, %cst_16 : f32
      %c0_17 = arith.constant 0 : index
      %c0_18 = arith.constant 0 : index
      %40 = memref.load %arg3[%c0_17, %c0_18] : memref<1x1xf32, #tpu.memory_space<smem>>
      memref.store %39, %arg3[%c0_17, %c0_18] : memref<1x1xf32, #tpu.memory_space<smem>>
    } else {
    }
    return
  }
  func.func @transform_0(%arg0: i32) -> (i32, i32) {
    %c0_i32 = arith.constant 0 : i32
    %c0_i32_0 = arith.constant 0 : i32
    return %arg0, %c0_i32 : i32, i32
  }
  func.func @transform_1(%arg0: i32) -> (i32, i32) {
    %c0_i32 = arith.constant 0 : i32
    %c0_i32_0 = arith.constant 0 : i32
    return %arg0, %c0_i32 : i32, i32
  }
  func.func @transform_2(%arg0: i32) -> (i32, i32) {
    %c0_i32 = arith.constant 0 : i32
    %c0_i32_0 = arith.constant 0 : i32
    %c0_i32_1 = arith.constant 0 : i32
    return %c0_i32, %c0_i32_0 : i32, i32
  }
}

</mosaic_0001>

<bundles_post_ra>
// kernel: tpu_custom_call.1
= control target key start
LH: loop header
LB: loop body
LE: loop exit
PB: predicated region body
PF: predicated region fallthrough
CT: control target
= control target key end

     0   :  { %7 = vsyncpa [#allocation4], 0  ;;  %s406_s9 = smov 0   ;;  %s433_s0 = inlined_call_operand.vmem [shape: f32[50,32], index: 0, kind: input, shape index: {}]   ;;  %s434_s1 = inlined_call_operand.vmem [shape: s32[50,1], index: 1, kind: input, shape index: {}]   ;;  %s435_s2 = inlined_call_operand.hbm [shape: f32[1,1], index: 2, kind: output, shape index: {}]  }
   0x1 LB: > { %s412_s10 = sadd.s32 4294967295, %s386_s9   ;;  %p328_p0 = scmp.ge.s32.totalorder %s386_s9, 1  ;;  %s386_s9 = sphi %s406_s9, %s13_s9  }
   0x2   : > { %p136_p1 = scmp.lt.s32.totalorder %s386_s9, 5 }
   0x4   : > { %p137_p2 = pnand %p328_p0, %p136_p1 }
   0x5   : > { %s329_s11 = sshll.u32 (!%p137_p2), %s412_s10, 1  ;;  %p333_p4 = scmp.ne.s32.totalorder (!%p137_p2), %s412_s10, 0 }
   0x6   : > { %140 = sbr.rel (%p137_p2) target bundleno = 581 (0x245), region = 28  ;;  %p171_p3 = scmp.lt.s32.totalorder (!%p137_p2), %s329_s11, 6 }
   0xb   : > { %s437_s11 = smov (!%p171_p3, %s329_s11), 6  ;;  %197 = sbr.rel (%p333_p4) target bundleno = 18 (0x12), region = 32 }
   0xc   : > { %s330_s12 = sshll.u32 %s437_s11, 3 }
   0xd   : > { %s174_s15 = scalar_lea.vmem %s433_s0, %s330_s12  ;;  %s188_s18 = scalar_lea.vmem %s434_s1, %s330_s12 }
  0x10   : > { %vm198_vm0 = vcmask 0   ;;  %v388_v0 = vmov 0.0  }
  0x11   : > { %199 = vst.msk [vmem:[#allocation2] sm:$0x1] %vm198_vm0, %v388_v0 }
  0x12 PF: > { %v202_v1 = vld [vmem:[%s188_s18] sm:$0xff]  ;;  %v389_v2 = vmov 0   ;;  %v203_v3 = vld [vmem:[%s188_s18 + $0x8] sm:$0xff]  ;;  %v204_v4 = vlaneseq  ;;  %vm216_vm1 = vcmask 261120   ;;  %s334_s19 = sshll.u32 %s412_s10, 4  ;;  %vm241_vm6 = vcmask 7168  }
  0x13   : > { %361 = vset.pattern.permute.xlu0 %v389_v2  ;;  %v200_v6 = vld [vmem:[%s174_s15] sm:$0xff]  ;;  %v201_v10 = vld [vmem:[%s174_s15 + $0x8] sm:$0xff]  ;;  %v227_v15 = vstv %s334_s19  ;;  %vm256_vm7 = vcmask 0   ;;  %p335_p5 = scmp.ne.s32.totalorder %s412_s10, 3 }
  0x14   : > { %207 = vperm.xlu0 %361, %v202_v1   ;;  %v205_v5 = vand.u32 127, %v204_v4  ;;  %v225_v14 = vshrl.u32 %v204_v4, 7 }
  0x16   : > { %v228_v16 = vadd.s32 %v227_v15, %v225_v14  ;;  %v226_v17 = vadd.s32 8, %v225_v14 }
  0x18   : > { %210 = vperm.xlu0 %361, %v203_v3   ;;  %vm230_vm4 = vcmp.lt.s32.totalorder %v228_v16, 50  ;;  %v229_v18 = vadd.s32 %v227_v15, %v226_v17  ;;  %v234_v39 = vld [vmem:[#allocation2] sm:$0x1] }
  0x1a   : > { %vm231_vm5 = vcmp.lt.s32.totalorder %v229_v18, 50 }
  0x8f   : > { %v208_v7 = vpop.permute.xlu0 %207 }
  0x90   : > { %vm212_vm2 = vcmp.eq.s32.totalorder %v205_v5, %v208_v7 }
  0x91   : > { %v214_v8 = vsel %vm212_vm2, %v200_v6, 0.0 }
  0x92   : > { %v217_v9 = vsel %vm216_vm1, %v214_v8, 0.0 }
  0x93   : > { %v211_v11 = vpop.permute.xlu0 %210  ;;  %218 = vadd.xlane.f32.xlu1 %v217_v9 }
  0x94   : > { %vm213_vm3 = vcmp.eq.s32.totalorder %v205_v5, %v211_v11 }
  0x95   : > { %v215_v12 = vsel %vm213_vm3, %v201_v10, 0.0 }
  0x96   : > { %v220_v13 = vsel %vm216_vm1, %v215_v12, 0.0 }
  0x97   : > { %221 = vadd.xlane.f32.xlu1 %v220_v13 }
 0x11c   : > { %v219_v19 = vpop.xlane.xlu1 %218 }
 0x11d   : > { %v232_v20 = vsel %vm230_vm4, %v219_v19, 1.0 }
 0x11e   : > { %362 = vlog2.f32 %v232_v20 }
 0x120   : > { %v222_v21 = vpop.xlane.xlu1 %221 }
 0x121   : > { %v233_v22 = vsel %vm231_vm5, %v222_v21, 1.0 }
 0x122   : > { %364 = vlog2.f32 %v233_v22 }
 0x12b   : > { %v363_v23 = vpop.eup %362 }
 0x12c   : > { %v236_v24 = vmul.f32 0.6931472, %v363_v23 }
 0x12e   : > { %v239_v27 = vsub.f32 0.0, %v236_v24 }
 0x12f   : > { %v365_v25 = vpop.eup %364 }
 0x130   : > { %v238_v26 = vmul.f32 0.6931472, %v365_v25  ;;  %v242_v29 = vsel %vm241_vm6, %v239_v27, 0.0 }
 0x132   : > { %v240_v28 = vsub.f32 0.0, %v238_v26 }
 0x134   : > { %v243_v30 = vsel %vm241_vm6, %v240_v28, 0.0 }
 0x135   : > { %v244_v31 = vadd.f32 %v243_v30, %v242_v29 }
 0x137   : > { %245 = vadd.xlane.f32.xlu0 %v244_v31 }
 0x1c0   : > { %v246_v32 = vpop.xlane.xlu0 %245 }
 0x1c1   : > { %v247_v33 = vrot.slane %v246_v32, 4 }
 0x1c3   : > { %v248_v34 = vadd.f32 %v247_v33, %v246_v32 }
 0x1c5   : > { %v249_v35 = vrot.slane %v248_v34, 2 }
 0x1c7   : > { %v250_v36 = vadd.f32 %v249_v35, %v248_v34 }
 0x1c9   : > { %v251_v37 = vrot.slane %v250_v36, 1 }
 0x1cb   : > { %v252_v38 = vadd.f32 %v251_v37, %v250_v36 }
 0x1cd   : > { %340 = vpush %v252_v38 }
 0x1fe   : > { %s341_s20 = spop %340  ;;  %261 = sbr.rel (%p335_p5) target bundleno = 575 (0x23f), region = 36 }
 0x1ff   : > { %v254_v40 = vstv %s341_s20 }
 0x200   : > { %v255_v41 = vadd.f32 %v254_v40, %v234_v39 }
 0x202   : > { %257 = vst.msk [vmem:[#allocation2] sm:$0x1] %vm256_vm7, %v255_v41 }
 0x209   : > { %v262_v42 = vld [vmem:[#allocation2] sm:$0x1] }
 0x20a   : > { %342 = vpush %v262_v42 }
 0x23b   : > { %s343_s21 = spop %342 }
 0x23c   : > { %s265_s22 = smul.f32 0.02, %s343_s21 }
 0x23e   : > { %267 = sst [smem:[#allocation3]] %s265_s22 }
 0x23f PF: > { %p348_p6 = scmp.eq.s32.totalorder %s412_s10, 3  ;;  %s390_s23 = smov [#allocation3]  }
 0x241   : > { %345 = dma.smem_to_hbm (%p348_p6), %s390_s23, 16, %s435_s2, [#allocation4]  }
 0x242   : > { %381 = dma.done.wait (%p348_p6), [#allocation4], 16  }
 0x243   : > { %383 = vsyncadd (%p348_p6), [#allocation4], 4294967280 }
 0x244   : > { %281 = sfence }
 0x245 PF: > { %s13_s9 = sadd.s32 1, %s386_s9  }
 0x246   : > { %p10_p7 = scmp.ge.s32.totalorder %s13_s9, 6  }
 0x248   :  { %12 = sbr.rel (!%p10_p7) target bundleno = 1 (0x1), region = 67 }
 0x24d   :  { %287 = vsyncpa [#allocation4], 1 }
 0x24e   :  { %289 = vsyncpa [#allocation4 + $0x1], 1 }

</bundles_post_ra>
